<compile_context>
chip_gen: v7x
topology: tpu7x:2x2x1
jax: 0.10.0
libtpu: 0.0.40
codegen_flags: <defaults>
</compile_context>

<pallas_src>
import functools

import jax
import jax.numpy as jnp
from jax.experimental import pallas as pl
from jax.experimental.pallas import tpu as pltpu


# ----------------------------------------------------------------------------
# Per-generation VMEM / tile budgets
# ----------------------------------------------------------------------------
@functools.lru_cache(maxsize=None)
def _vmem_budgets():
    """Returns (vmem_limit_bytes, block_byte_budget) for the current TPU generation.

    128-MiB-VMEM chips (v5e / v6e): large streaming tiles (these kernels are HBM-bound).
    64-MiB-VMEM chips (v7x) or unknown: conservative budgets that still fit comfortably.
    """
    cap = None
    try:
        info = pltpu.get_tpu_info()
        cap = getattr(info, "vmem_capacity_bytes", None)
    except Exception:
        cap = None
    if cap is not None and cap >= 100 * 1024 * 1024:        # v5e / v6e (128 MiB VMEM)
        return 64 * 1024 * 1024, 24 * 1024 * 1024
    return 48 * 1024 * 1024, 16 * 1024 * 1024               # v7x (64 MiB) / unknown


def _pick_block_rows(rows, vocab, n_streams):
    """Largest row tile (multiple of 8) whose double-buffered f32 vocab-wide blocks fit the
    per-generation budget; one full block when the whole problem fits (splitting a problem
    that fits one tile is pure per-step overhead on single-TC chips)."""
    _, budget = _vmem_budgets()
    per_row = max(1, n_streams * vocab * 4 * 2)              # f32, x2 double-buffer
    br = max(8, (budget // per_row) // 8 * 8)
    return rows if br >= rows else br


# TODO(synk): on v7x (2 TensorCores) the row axis should be pltpu.CORE_PARALLEL (or an
# explicit core_map split); kept "parallel" here so the script runs cleanly on any generation.


# ----------------------------------------------------------------------------
# Kernel 1: temperature-scaled log_softmax over the vocab (last) axis.
# ----------------------------------------------------------------------------
def _log_softmax_kernel(x_ref, o_ref, *, inv_temp):
    x = x_ref[...].astype(jnp.float32) * inv_temp
    m = jnp.max(x, axis=-1, keepdims=True)
    s = x - m
    lse = jnp.log(jnp.sum(jnp.exp(s), axis=-1, keepdims=True))
    o_ref[...] = (s - lse).astype(o_ref.dtype)


def log_softmax_temperature(logits, temperature=1.0, out_dtype=jnp.float32):
    rows, vocab = logits.shape
    br = _pick_block_rows(rows, vocab, n_streams=2)          # input + output streamed
    vmem_limit, _ = _vmem_budgets()
    return pl.pallas_call(
        functools.partial(_log_softmax_kernel, inv_temp=1.0 / float(temperature)),
        out_shape=jax.ShapeDtypeStruct((rows, vocab), out_dtype),
        grid=(pl.cdiv(rows, br),),
        in_specs=[pl.BlockSpec((br, vocab), lambda i: (i, 0))],
        out_specs=pl.BlockSpec((br, vocab), lambda i: (i, 0)),
        compiler_params=pltpu.CompilerParams(
            dimension_semantics=("parallel",),
            vmem_limit_bytes=vmem_limit),
    )(logits)


# ----------------------------------------------------------------------------
# Kernel 2: greedy sample_next_word on precomputed logprobs.
# Outputs are plain (br, 1) columns — the masked partial store is negligible next to the
# br*vocab*4-byte HBM read; no lane-transpose gymnastics.
# ----------------------------------------------------------------------------
def _greedy_kernel(lp_ref, val_ref, idx_ref):
    x = lp_ref[...].astype(jnp.float32)                      # (br, vocab)
    vocab = x.shape[-1]
    maxv = jnp.max(x, axis=-1, keepdims=True)
    lane = jax.lax.broadcasted_iota(jnp.int32, x.shape, 1)
    first_idx = jnp.min(jnp.where(x == maxv, lane, vocab), axis=-1, keepdims=True)
    val_ref[...] = maxv
    idx_ref[...] = first_idx


def greedy_sample(logprobs):
    rows, vocab = logprobs.shape
    br = _pick_block_rows(rows, vocab, n_streams=1)
    vmem_limit, _ = _vmem_budgets()
    vals, idxs = pl.pallas_call(
        _greedy_kernel,
        out_shape=(jax.ShapeDtypeStruct((rows, 1), jnp.float32),
                   jax.ShapeDtypeStruct((rows, 1), jnp.int32)),
        grid=(pl.cdiv(rows, br),),
        in_specs=[pl.BlockSpec((br, vocab), lambda i: (i, 0))],
        out_specs=(pl.BlockSpec((br, 1), lambda i: (i, 0)),
                   pl.BlockSpec((br, 1), lambda i: (i, 0))),
        compiler_params=pltpu.CompilerParams(
            dimension_semantics=("parallel",),
            vmem_limit_bytes=vmem_limit),
    )(logprobs)
    return idxs[:, 0], vals                                   # it (rows,), logprobs (rows, 1)


# ----------------------------------------------------------------------------
# Kernel 3 (fused): log_softmax(logits / T) + greedy in one pass.
# max(log_softmax) == -logsumexp(x - max(x)); argmax(log_softmax) == argmax(x).
# Removes a full HBM write + read of the [rows, vocab] logprob tensor per decode step.
# ----------------------------------------------------------------------------
def _fused_greedy_kernel(x_ref, val_ref, idx_ref, *, inv_temp):
    x = x_ref[...].astype(jnp.float32) * inv_temp             # (br, vocab)
    vocab = x.shape[-1]
    m = jnp.max(x, axis=-1, keepdims=True)
    lse = jnp.log(jnp.sum(jnp.exp(x - m), axis=-1, keepdims=True))
    lane = jax.lax.broadcasted_iota(jnp.int32, x.shape, 1)
    first_idx = jnp.min(jnp.where(x == m, lane, vocab), axis=-1, keepdims=True)
    val_ref[...] = -lse                                       # logprob at the argmax
    idx_ref[...] = first_idx


def fused_greedy_sample(logits, temperature=1.0):
    rows, vocab = logits.shape
    br = _pick_block_rows(rows, vocab, n_streams=1)
    vmem_limit, _ = _vmem_budgets()
    vals, idxs = pl.pallas_call(
        functools.partial(_fused_greedy_kernel, inv_temp=1.0 / float(temperature)),
        out_shape=(jax.ShapeDtypeStruct((rows, 1), jnp.float32),
                   jax.ShapeDtypeStruct((rows, 1), jnp.int32)),
        grid=(pl.cdiv(rows, br),),
        in_specs=[pl.BlockSpec((br, vocab), lambda i: (i, 0))],
        out_specs=(pl.BlockSpec((br, 1), lambda i: (i, 0)),
                   pl.BlockSpec((br, 1), lambda i: (i, 0))),
        compiler_params=pltpu.CompilerParams(
            dimension_semantics=("parallel",),
            vmem_limit_bytes=vmem_limit),
    )(logits)
    return idxs[:, 0], vals


# ----------------------------------------------------------------------------
# Kernel 4: beam_step core — per-beam (per-row) top-beam_size over the vocab, with the
# temperature log_softmax optionally fused in.  Works on a (batch*beams, vocab) 2-D layout
# (no sublane padding waste), knocks winners out BY INDEX so fully -inf rows still yield
# distinct indices (matches lax.top_k), and emits exactly one (br, beam_size) store per
# output.  The global top-beam_size per batch row is guaranteed to be among the per-beam
# top-beam_size, so the cross-beam merge is a tiny host-side top_k.
# TODO(synk): a packed value+index single-sweep reduction would further cut VPU sweeps on v7x.
# ----------------------------------------------------------------------------
def _beam_row_topk_kernel(x_ref, val_ref, idx_ref, *, inv_temp, beam_size,
                          apply_log_softmax):
    x = x_ref[...].astype(jnp.float32)                        # (br, vocab)
    if apply_log_softmax:
        x = x * inv_temp
        m = jnp.max(x, axis=-1, keepdims=True)
        lse = jnp.log(jnp.sum(jnp.exp(x - m), axis=-1, keepdims=True))
        x = x - m - lse
    vocab = x.shape[-1]
    lane = jax.lax.broadcasted_iota(jnp.int32, x.shape, 1)
    neg_inf = jnp.float32(-jnp.inf)
    cand = x
    avail = lane                                              # lane idx, or `vocab` once taken
    vals, idxs = [], []
    for _ in range(beam_size):                                # small, unrolled
        mk = jnp.max(cand, axis=-1, keepdims=True)            # (br, 1)
        ik = jnp.min(jnp.where(cand == mk, avail, vocab), axis=-1, keepdims=True)
        vals.append(mk)
        idxs.append(ik)
        knocked = lane == ik
        cand = jnp.where(knocked, neg_inf, cand)
        avail = jnp.where(knocked, vocab, avail)              # index knockout: -inf-safe
    val_ref[...] = jnp.concatenate(vals, axis=-1)             # one (br, beam_size) store
    idx_ref[...] = jnp.concatenate(idxs, axis=-1)


def _beam_row_topk(scores2d, beam_size, inv_temp, apply_log_softmax):
    rows, vocab = scores2d.shape
    br = _pick_block_rows(rows, vocab, n_streams=1)
    vmem_limit, _ = _vmem_budgets()
    kern = functools.partial(_beam_row_topk_kernel, inv_temp=inv_temp,
                             beam_size=beam_size, apply_log_softmax=apply_log_softmax)
    return pl.pallas_call(
        kern,
        out_shape=(jax.ShapeDtypeStruct((rows, beam_size), jnp.float32),
                   jax.ShapeDtypeStruct((rows, beam_size), jnp.int32)),
        grid=(pl.cdiv(rows, br),),
        in_specs=[pl.BlockSpec((br, vocab), lambda i: (i, 0))],
        out_specs=(pl.BlockSpec((br, beam_size), lambda i: (i, 0)),
                   pl.BlockSpec((br, beam_size), lambda i: (i, 0))),
        compiler_params=pltpu.CompilerParams(
            dimension_semantics=("parallel",),
            vmem_limit_bytes=vmem_limit),
    )(scores2d)


def beam_step_topk(beam_logprobs_sum, scores, beam_size, *, temperature=1.0,
                   scores_are_logits=False):
    """Core selection math of beam_step.  `scores` is (batch, beams, vocab): logprobs
    (default, so decoding_constraint / diversity tweaks can be applied first) or raw
    logits (fused temperature log_softmax, no [rows, vocab] logprob round-trip)."""
    batch, beams, vocab = scores.shape
    assert beam_logprobs_sum.shape == (batch, beams)
    rows = batch * beams
    vals, vidx = _beam_row_topk(scores.reshape(rows, vocab), beam_size,
                                1.0 / float(temperature), scores_are_logits)
    # Tiny (batch, beams*beam_size) cross-beam merge — no vocab-sized sort anywhere.
    cand = (beam_logprobs_sum[:, :, None]
            + vals.reshape(batch, beams, beam_size)).reshape(batch, beams * beam_size)
    ys, pos = jax.lax.top_k(cand, beam_size)
    beam_ix = pos // beam_size
    selected_ix = jnp.take_along_axis(vidx.reshape(batch, beams * beam_size), pos, axis=1)
    return ys, beam_ix, selected_ix


# ----------------------------------------------------------------------------
# CaptionModel wrapper — same mode-dispatching forward as the torch base class.
# ----------------------------------------------------------------------------
class CaptionModel:
    def __init__(self, vocab_size=127, eos_idx=0, max_seq_length=8):
        self.vocab_size = vocab_size
        self.eos_idx = eos_idx
        self.max_seq_length = max_seq_length

    # forward(*args, mode=...) dispatches to self._<mode>(*args, **kwargs)
    def forward(self, *args, **kwargs):
        mode = kwargs.pop("mode", "forward")
        return getattr(self, "_" + mode)(*args, **kwargs)

    __call__ = forward

    # ----- modes ------------------------------------------------------------
    def _log_softmax(self, logits, temperature=1.0):
        return log_softmax_temperature(logits, temperature)

    def _sample_next_word(self, logprobs, sample_method="greedy", temperature=1.0):
        return self.sample_next_word(logprobs, sample_method, temperature)

    def _sample_next_word_fused(self, logits, temperature=1.0):
        return fused_greedy_sample(logits, temperature)

    def _beam_step(self, logprobs, beam_logprobs_sum, beam_size):
        return self.beam_step(logprobs, beam_logprobs_sum, beam_size)

    def _beam_step_fused(self, logits, beam_logprobs_sum, beam_size, temperature=1.0):
        batch = beam_logprobs_sum.shape[0]
        vocab = logits.shape[-1]
        return beam_step_topk(beam_logprobs_sum, logits.reshape(batch, -1, vocab),
                              beam_size, temperature=temperature, scores_are_logits=True)

    # ----- decoding utilities (compute in Pallas, glue in JAX) ---------------
    def sample_next_word(self, logprobs, sample_method, temperature):
        if sample_method == "greedy":
            return greedy_sample(logprobs)
        # TODO(synk): gumbel / top-k / top-p / categorical sampling need RNG + sort; not ported.
        raise NotImplementedError(sample_method)

    def beam_step(self, logprobs, beam_logprobs_sum, beam_size):
        """Core selection of beam_step; beam_seq / done_beams / state bookkeeping stays on
        host in the original model."""
        # TODO(synk): beam_search table bookkeeping (beam_seq, done_beams, state gather) not ported.
        batch = beam_logprobs_sum.shape[0]
        vocab = logprobs.shape[-1]
        return beam_step_topk(beam_logprobs_sum, logprobs.reshape(batch, -1, vocab), beam_size)


# ----------------------------------------------------------------------------
if __name__ == "__main__":
    key = jax.random.PRNGKey(0)
    batch = 2
    bdash = 4                # beam_size // group_size
    vocab = 128              # vocab_size + 1
    rows = batch * bdash

    model = CaptionModel(vocab_size=vocab - 1, eos_idx=0, max_seq_length=8)

    k1, k2 = jax.random.split(key)
    logits = jax.random.normal(k1, (rows, vocab), dtype=jnp.float32)
    beam_logprobs_sum = jax.random.normal(k2, (batch, bdash), dtype=jnp.float32)

    temperature = 1.5
    lp_ref = jax.nn.log_softmax(logits / temperature, axis=-1)

    # 1) log_softmax(logits / temperature)
    lp = model(logits, temperature, mode="log_softmax")
    lp = jax.block_until_ready(lp)
    assert jnp.allclose(lp, lp_ref, atol=1e-5), "log_softmax mismatch"

    # 2) greedy sample_next_word on precomputed logprobs
    it, sample_lp = model(lp, "greedy", 1.0, mode="sample_next_word")
    it = jax.block_until_ready(it)
    sample_lp = jax.block_until_ready(sample_lp)
    assert jnp.array_equal(it, jnp.argmax(lp, axis=-1).astype(jnp.int32))
    assert jnp.allclose(sample_lp[:, 0], jnp.max(lp, axis=-1), atol=1e-6)

    # 2b) fused log_softmax + greedy straight from raw logits
    it_f, sample_lp_f = model(logits, temperature, mode="sample_next_word_fused")
    it_f = jax.block_until_ready(it_f)
    sample_lp_f = jax.block_until_ready(sample_lp_f)
    assert jnp.array_equal(it_f, jnp.argmax(lp_ref, axis=-1).astype(jnp.int32))
    assert jnp.allclose(sample_lp_f[:, 0], jnp.max(lp_ref, axis=-1), atol=1e-5)

    # 3) beam_step on precomputed logprobs (constraint/diversity-compatible path)
    ys, beam_ix, selected_ix = model(lp, beam_logprobs_sum, bdash, mode="beam_step")
    ys = jax.block_until_ready(ys)
    beam_ix = jax.block_until_ready(beam_ix)
    selected_ix = jax.block_until_ready(selected_ix)
    lp3 = lp.reshape(batch, bdash, vocab)
    cand_ref = (beam_logprobs_sum[:, :, None] + lp3).reshape(batch, -1)
    ys_ref, _ = jax.lax.top_k(cand_ref, bdash)
    assert jnp.allclose(ys, ys_ref, atol=1e-5), "beam candidate mismatch"
    barange = jnp.arange(batch)[:, None]
    recon = beam_logprobs_sum[barange, beam_ix] + lp3[barange, beam_ix, selected_ix]
    assert jnp.allclose(recon, ys, atol=1e-5), "beam index mismatch"

    # 3b) beam_step fused with the temperature log_softmax (no logprob round-trip)
    ys2, beam_ix2, selected_ix2 = model(logits, beam_logprobs_sum, bdash, temperature,
                                        mode="beam_step_fused")
    ys2 = jax.block_until_ready(ys2)
    lp_ref3 = lp_ref.reshape(batch, bdash, vocab)
    cand_ref2 = (beam_logprobs_sum[:, :, None] + lp_ref3).reshape(batch, -1)
    ys_ref2, _ = jax.lax.top_k(cand_ref2, bdash)
    assert jnp.allclose(ys2, ys_ref2, atol=1e-5), "fused beam candidate mismatch"
    recon2 = (beam_logprobs_sum[barange, beam_ix2]
              + lp_ref3[barange, beam_ix2, selected_ix2])
    assert jnp.allclose(recon2, ys2, atol=1e-5), "fused beam index mismatch"

    print("KERNEL_OK")
</pallas_src>

<mosaic_0001>
module attributes {stable_mosaic.version = 11 : i64} {
  func.func @_log_softmax_kernel(%arg0: i32, %arg1: memref<8x128xf32, #tpu.memory_space<vmem>>, %arg2: memref<8x128xf32, #tpu.memory_space<vmem>>) attributes {dimension_semantics = [#tpu.dimension_semantics<parallel>], iteration_bounds = array<i64: 1>, scalar_prefetch = 0 : i64, scratch_operands = 0 : i64, tpu.core_type = #tpu.core_type<tc>, window_params = [{transform_indices = @transform_0, window_bounds = array<i64: 8, 128>}, {transform_indices = @transform_1, window_bounds = array<i64: 8, 128>}]} {
    %c0 = arith.constant 0 : index
    %c0_0 = arith.constant 0 : index
    %0 = vector.load %arg1[%c0, %c0_0] : memref<8x128xf32, #tpu.memory_space<vmem>>, vector<8x128xf32>
    %cst = arith.constant 0.666666686 : f32
    %1 = vector.broadcast %cst : f32 to vector<8x128xf32>
    %2 = arith.mulf %0, %1 : vector<8x128xf32>
    %cst_1 = arith.constant dense<0xFF800000> : vector<8xf32>
    %3 = vector.multi_reduction <maximumf>, %2, %cst_1 [1] : vector<8x128xf32> to vector<8xf32>
    %4 = vector.shape_cast %3 : vector<8xf32> to vector<8x1xf32>
    %5 = vector.broadcast %4 : vector<8x1xf32> to vector<8x128xf32>
    %6 = arith.subf %2, %5 : vector<8x128xf32>
    %7 = math.exp %6 : vector<8x128xf32>
    %cst_2 = arith.constant dense<0.000000e+00> : vector<8xf32>
    %8 = vector.multi_reduction <add>, %7, %cst_2 [1] : vector<8x128xf32> to vector<8xf32>
    %9 = vector.shape_cast %8 : vector<8xf32> to vector<8x1xf32>
    %10 = math.log %9 : vector<8x1xf32>
    %11 = vector.broadcast %10 : vector<8x1xf32> to vector<8x128xf32>
    %12 = arith.subf %6, %11 : vector<8x128xf32>
    %c0_3 = arith.constant 0 : index
    %c0_4 = arith.constant 0 : index
    %13 = vector.load %arg2[%c0_3, %c0_4] : memref<8x128xf32, #tpu.memory_space<vmem>>, vector<8x128xf32>
    tpu.vector_store %arg2[%c0_3, %c0_4], %12 {strides = array<i32>} : memref<8x128xf32, #tpu.memory_space<vmem>>, vector<8x128xf32>,
    return
  }
  func.func @transform_0(%arg0: i32) -> (i32, i32) {
    %c0_i32 = arith.constant 0 : i32
    %c0_i32_0 = arith.constant 0 : i32
    return %arg0, %c0_i32 : i32, i32
  }
  func.func @transform_1(%arg0: i32) -> (i32, i32) {
    %c0_i32 = arith.constant 0 : i32
    %c0_i32_0 = arith.constant 0 : i32
    return %arg0, %c0_i32 : i32, i32
  }
}

</mosaic_0001>

<bundles_post_ra>
// kernel: tpu_custom_call.1
= control target key start
LH: loop header
LB: loop body
LE: loop exit
PB: predicated region body
PF: predicated region fallthrough
CT: control target
= control target key end

     0   :  { %6 = vsyncpa [#allocation3], 0  ;;  %s139_s0 = inlined_call_operand.hbm [shape: f32[8,128], index: 0, kind: input, shape index: {}]   ;;  %s140_s1 = inlined_call_operand.hbm [shape: f32[8,128], index: 1, kind: output, shape index: {}]  }
   0x1   :  { %7 = vsyncpa [#allocation4], 0  ;;  %s103_s6 = smov [#allocation2]   ;;  %s55_s10 = scalar_lea.hbm %s139_s0, 128 }
   0x2   :  { %s14_s7 = sshll.u32 %s103_s6, 4  ;;  %p56_p0 = scmp.ne.s32.totalorder %s139_s0, %s55_s10  ;;  %s15_s7 = int_to_ptr.vmem [resolvable:$true] %s14_s7 }
   0x3   :  { %p59_p1 = scmp.lt.u32.totalorder %s55_s10, %s139_s0 }
   0x5   :  { %p61_p2 = pnand %p59_p1, %p56_p0 }
   0x7   :  { %64 = shalt.err (!%p61_p2)
}
   0x8   :  { %s65_s15 = scalar_lea.vmem %s15_s7, 128  ;;  %p70_p4 = scmp.lt.s32.totalorder %s15_s7, %s15_s7 }
   0x9   :  { %p66_p3 = scmp.ne.s32.totalorder %s15_s7, %s65_s15  ;;  %p71_p5 = scmp.lt.s32.totalorder %s65_s15, %s65_s15 }
   0xb   :  { %p72_p6 = por %p71_p5, %p70_p4 }
   0xd   :  { %p73_p7 = pnand %p72_p6, %p66_p3 }
   0xf   :  { %76 = shalt.err (!%p73_p7)
}
  0x10   :  { %17 = dma.hbm_to_vmem [thread:$0]  %s139_s0, 128, %s15_s7, [#allocation3]  }
  0x11   :  { %99 = dma.done.wait [#allocation3], 128  }
  0x12   :  { %100 = vsyncadd [#allocation3], 4294967168  ;;  %v21_v0 = vld [vmem:[#allocation2] sm:$0xff]  ;;  %s104_s18 = smov [#allocation5]  }
  0x13   :  { %v22_v1 = vmul.f32 0.6666667, %v21_v0  ;;  %s40_s19 = sshll.u32 %s104_s18, 4  ;;  %s41_s19 = int_to_ptr.vmem [resolvable:$true] %s40_s19 }
  0x14   :  { %s77_s0 = scalar_lea.vmem %s41_s19, 128  ;;  %p82_p9 = scmp.lt.s32.totalorder %s41_s19, %s41_s19 }
  0x15   :  { %23 = vmax.xlane.f32.xlu0 %v22_v1  ;;  %p78_p8 = scmp.ne.s32.totalorder %s41_s19, %s77_s0  ;;  %p83_p10 = scmp.lt.s32.totalorder %s77_s0, %s77_s0 }
  0x17   :  { %p84_p11 = por %p83_p10, %p82_p9 }
  0x19   :  { %p85_p12 = pnand %p84_p11, %p78_p8 }
  0xa2   :  { %v24_v2 = vpop.xlane.xlu0 %23 }
  0xa3   :  { %v25_v3 = vsub.f32 %v22_v1, %v24_v2 }
  0xa5   :  { %v26_v4 = vmul.f32 1.442695, %v25_v3 }
  0xa7   :  { %51 = vpow2.f32 %v26_v4 }
  0xb1   :  { %v52_v5 = vpop.eup %51 }
  0xb2   :  { %28 = vadd.xlane.f32.xlu0 %v52_v5 }
 0x13f   :  { %v29_v6 = vpop.xlane.xlu0 %28 }
 0x140   :  { %53 = vlog2.f32 %v29_v6 }
 0x14a   :  { %v54_v7 = vpop.eup %53 }
 0x14b   :  { %v31_v8 = vmul.f32 0.6931472, %v54_v7 }
 0x14d   :  { %v32_v9 = vsub.f32 %v25_v3, %v31_v8 }
 0x14f   :  { %33 = vst [vmem:[#allocation5] sm:$0xff] %v32_v9 }
 0x150   :  { %88 = shalt.err (!%p85_p12)
}
 0x151   :  { %s89_s22 = scalar_lea.hbm %s140_s1, 128 }
 0x152   :  { %p90_p13 = scmp.ne.s32.totalorder %s140_s1, %s89_s22  ;;  %p93_p0 = scmp.lt.u32.totalorder %s89_s22, %s140_s1 }
 0x154   :  { %p95_p1 = pnand %p93_p0, %p90_p13 }
 0x156   :  { %98 = shalt.err (!%p95_p1)
}
 0x157   :  { %43 = dma.vmem_to_hbm [thread:$0]  %s41_s19, 128, %s140_s1, [#allocation4]  }
 0x158   :  { %101 = dma.done.wait [#allocation4], 128  }
 0x159   :  { %102 = vsyncadd [#allocation4], 4294967168 }
 0x15a   :  { %47 = vsyncpa [#allocation3], 1 }
 0x15b   :  { %48 = vsyncpa [#allocation4], 1 }

</bundles_post_ra>
